<compile_context>
chip_gen: v5e
topology: v5e:2x2
jax: 0.10.0
libtpu: 0.0.40
codegen_flags: <defaults>
</compile_context>

<pallas_src>
import jax
import jax.numpy as jnp
import numpy as np
from jax.experimental import pallas as pl
from jax.experimental.pallas import tpu as pltpu


def _round_up(x, m):
    return ((x + m - 1) // m) * m


def _clip_finetuner_kernel(x_ref, w_enc_ref, w_cls_ref, b_ref, o_ref, acc_ref):
    k = pl.program_id(1)

    @pl.when(k == 0)
    def _():
        acc_ref[...] = jnp.zeros_like(acc_ref)

    # Synthetic encode_image: accumulate [TILE_N, TILE_K] @ [TILE_K, D_feat] (MXU),
    # f32 accumulation (= .float() semantics for the downstream math).
    acc_ref[...] += jnp.dot(x_ref[...], w_enc_ref[...],
                            preferred_element_type=jnp.float32)

    @pl.when(k == pl.num_programs(1) - 1)
    def _():
        feats = acc_ref[...]                                   # float32
        # F.normalize(dim=-1): x / clamp_min(||x||_2, 1e-12)
        # == x * rsqrt(clamp(sum(x^2), 1e-24))  -> rsqrt runs on the EUP slot.
        sq = jnp.sum(feats * feats, axis=-1, keepdims=True)
        inv = jax.lax.rsqrt(jnp.maximum(sq, 1e-24))
        feats = feats * inv
        # classifier: feats @ W^T + b, fused bias into the single dense store.
        logits = jnp.dot(feats, w_cls_ref[...],
                         preferred_element_type=jnp.float32)
        o_ref[...] = logits + b_ref[...]


def clip_finetuner_forward(x_nchw, w_enc, w_cls_t, b_cls, *,
                           use_bf16_matmul=False):
    """x_nchw: [N, C, H, W]; returns logits [N, num_classes] float32.

    w_enc:   [C*H*W, d_feat]  synthetic encode_image projection
    w_cls_t: [d_feat, num_classes]  classifier weight (transposed)
    b_cls:   [num_classes]
    """
    n = x_nchw.shape[0]
    d_in = int(np.prod(x_nchw.shape[1:]))
    d_feat = w_enc.shape[1]
    num_classes = w_cls_t.shape[1]

    # --- tile sizing (lane-dense; VMEM-safe across v5e/v6e/v7x) ---
    tile_n = min(256, _round_up(n, 8))
    tile_k = min(512, _round_up(d_in, 128))
    n_pad = _round_up(n, tile_n)
    k_pad = _round_up(d_in, tile_k)
    f_pad = _round_up(d_feat, 128)         # lane-dense feature axis
    c_pad = _round_up(num_classes, 128)    # lane-dense class axis (dense vst)

    # --- glue: flatten NCHW -> [N, C*H*W] (row-major, == torch .reshape) and
    #     zero-pad to tile multiples (zeros are exact no-ops in the matmuls). ---
    x_flat = x_nchw.reshape(n, d_in)
    in_dtype = jnp.bfloat16 if use_bf16_matmul else jnp.float32
    x_p = jnp.zeros((n_pad, k_pad), in_dtype).at[:n, :d_in].set(
        x_flat.astype(in_dtype))
    w_enc_p = jnp.zeros((k_pad, f_pad), in_dtype).at[:d_in, :d_feat].set(
        w_enc.astype(in_dtype))
    w_cls_p = jnp.zeros((f_pad, c_pad), jnp.float32).at[:d_feat, :num_classes].set(
        w_cls_t.astype(jnp.float32))
    b_p = jnp.zeros((1, c_pad), jnp.float32).at[0, :num_classes].set(
        b_cls.astype(jnp.float32))

    grid = (n_pad // tile_n, k_pad // tile_k)

    itemsize = jnp.dtype(in_dtype).itemsize
    vmem_bytes = (2 * tile_n * tile_k * itemsize     # x tile, double-buffered
                  + 2 * tile_k * f_pad * itemsize    # w_enc tile, double-buffered
                  + 2 * f_pad * c_pad * 4            # w_cls (resident)
                  + 2 * c_pad * 4                    # bias
                  + 2 * tile_n * c_pad * 4           # out tile
                  + tile_n * f_pad * 4)              # f32 accumulator scratch
    vmem_limit = min(64 * 1024 * 1024,
                     max(2 * int(vmem_bytes), 16 * 1024 * 1024))

    cost = pl.CostEstimate(
        flops=2 * n_pad * k_pad * f_pad + 2 * n_pad * f_pad * c_pad,
        transcendentals=n_pad,
        bytes_accessed=(x_p.size * itemsize + w_enc_p.size * itemsize
                        + w_cls_p.size * 4 + b_p.size * 4 + n_pad * c_pad * 4))

    out = pl.pallas_call(
        _clip_finetuner_kernel,
        out_shape=jax.ShapeDtypeStruct((n_pad, c_pad), jnp.float32),
        grid_spec=pltpu.PrefetchScalarGridSpec(
            num_scalar_prefetch=0,
            grid=grid,
            in_specs=[
                pl.BlockSpec((tile_n, tile_k), lambda i, k: (i, k)),   # x tiles
                pl.BlockSpec((tile_k, f_pad), lambda i, k: (k, 0)),    # w_enc tiles
                pl.BlockSpec((f_pad, c_pad), lambda i, k: (0, 0)),     # w_cls resident
                pl.BlockSpec((1, c_pad), lambda i, k: (0, 0)),         # bias resident
            ],
            out_specs=pl.BlockSpec((tile_n, c_pad), lambda i, k: (i, 0)),
            scratch_shapes=[pltpu.VMEM((tile_n, f_pad), jnp.float32)],
        ),
        compiler_params=pltpu.CompilerParams(
            dimension_semantics=("parallel", "arbitrary"),
            vmem_limit_bytes=vmem_limit),
        cost_estimate=cost,
    )(x_p, w_enc_p, w_cls_p, b_p)

    return out[:n, :num_classes]


def _reference(x_nchw, w_enc, w_cls_t, b_cls):
    n = x_nchw.shape[0]
    x_flat = x_nchw.reshape(n, -1)
    feats = (x_flat @ w_enc).astype(jnp.float32)
    norm = jnp.maximum(jnp.linalg.norm(feats, axis=-1, keepdims=True), 1e-12)
    feats = feats / norm
    return feats @ w_cls_t + b_cls[None, :]


if __name__ == "__main__":
    # Small shapes consistent with the module's forward:
    #   images: [N=2, C=4, H=16, W=16]  (NCHW, like PyTorch)
    #   model.visual.output_dim = 32, num_classes = 8
    N, C, H, W = 2, 4, 16, 16
    D_IN = C * H * W          # 1024  -> 2 K-tiles of 512 (exercises the reduction)
    D_FEAT = 32               # model.visual.output_dim
    NUM_CLASSES = 8

    key = jax.random.PRNGKey(0)
    k_x, k_enc, k_w, k_b = jax.random.split(key, 4)

    x = jax.random.normal(k_x, (N, C, H, W), dtype=jnp.float32)
    # Synthetic encoder projection (stand-in for CLIP encode_image).
    w_enc = jax.random.normal(k_enc, (D_IN, D_FEAT), dtype=jnp.float32) * 0.02
    # nn.Linear(output_dim, num_classes): stored transposed for the kernel.
    lim = 1.0 / np.sqrt(D_FEAT)
    w_cls_t = jax.random.uniform(k_w, (D_FEAT, NUM_CLASSES),
                                 minval=-lim, maxval=lim, dtype=jnp.float32)
    b_cls = jax.random.uniform(k_b, (NUM_CLASSES,),
                               minval=-lim, maxval=lim, dtype=jnp.float32)

    logits = clip_finetuner_forward(x, w_enc, w_cls_t, b_cls)
    jax.block_until_ready(logits)

    ref = _reference(x, w_enc, w_cls_t, b_cls)
    np.testing.assert_allclose(np.asarray(logits), np.asarray(ref),
                               rtol=1e-5, atol=1e-5)
    print("KERNEL_OK")
</pallas_src>

<mosaic_0001>
module attributes {stable_mosaic.version = 11 : i64} {
  func.func @_clip_finetuner_kernel(%arg0: i32, %arg1: i32, %arg2: memref<8x512xf32, #tpu.memory_space<vmem>>, %arg3: memref<512x128xf32, #tpu.memory_space<vmem>>, %arg4: memref<128x128xf32, #tpu.memory_space<vmem>>, %arg5: memref<1x128xf32, #tpu.memory_space<vmem>>, %arg6: memref<8x128xf32, #tpu.memory_space<vmem>>, %arg7: memref<8x128xf32, #tpu.memory_space<vmem>>) attributes {dimension_semantics = [#tpu.dimension_semantics<parallel>, #tpu.dimension_semantics<arbitrary>], iteration_bounds = array<i64: 1, 2>, scalar_prefetch = 0 : i64, scratch_operands = 1 : i64, tpu.core_type = #tpu.core_type<tc>, window_params = [{transform_indices = @transform_0, window_bounds = array<i64: 8, 512>}, {transform_indices = @transform_1, window_bounds = array<i64: 512, 128>}, {pipeline_mode = #tpu.pipeline_mode<synchronous>, transform_indices = @transform_2, window_bounds = array<i64: 128, 128>}, {pipeline_mode = #tpu.pipeline_mode<synchronous>, transform_indices = @transform_3, window_bounds = array<i64: 1, 128>}, {transform_indices = @transform_4, window_bounds = array<i64: 8, 128>}]} {
    %c0_i32 = arith.constant 0 : i32
    %0 = arith.cmpi eq, %arg1, %c0_i32 : i32
    %1 = arith.extui %0 : i1 to i32
    %c0_i32_0 = arith.constant 0 : i32
    %2 = arith.cmpi ne, %1, %c0_i32_0 : i32
    scf.if %2 {
      %cst_9 = arith.constant 0.000000e+00 : f32
      %12 = vector.broadcast %cst_9 : f32 to vector<8x128xf32>
      %c0_10 = arith.constant 0 : index
      %c0_11 = arith.constant 0 : index
      %13 = vector.load %arg7[%c0_10, %c0_11] : memref<8x128xf32, #tpu.memory_space<vmem>>, vector<8x128xf32>
      tpu.vector_store %arg7[%c0_10, %c0_11], %12 {strides = array<i32>} : memref<8x128xf32, #tpu.memory_space<vmem>>, vector<8x128xf32>,
    } else {
    }
    %c0 = arith.constant 0 : index
    %c0_1 = arith.constant 0 : index
    %3 = vector.load %arg7[%c0, %c0_1] : memref<8x128xf32, #tpu.memory_space<vmem>>, vector<8x128xf32>
    %c0_2 = arith.constant 0 : index
    %c0_3 = arith.constant 0 : index
    %4 = vector.load %arg2[%c0_2, %c0_3] : memref<8x512xf32, #tpu.memory_space<vmem>>, vector<8x512xf32>
    %c0_4 = arith.constant 0 : index
    %c0_5 = arith.constant 0 : index
    %5 = vector.load %arg3[%c0_4, %c0_5] : memref<512x128xf32, #tpu.memory_space<vmem>>, vector<512x128xf32>
    %cst = arith.constant dense<0.000000e+00> : vector<8x128xf32>
    %6 = tpu.matmul %4, %5, %cst {dimension_numbers = #tpu.dot_dimension_numbers<[1], [0], [0], [1], [0, 0, 1, 1], [], []>} : vector<8x512xf32>, vector<512x128xf32>, vector<8x128xf32> -> vector<8x128xf32>
    %7 = arith.addf %3, %6 : vector<8x128xf32>
    %c0_6 = arith.constant 0 : index
    %c0_7 = arith.constant 0 : index
    %8 = vector.load %arg7[%c0_6, %c0_7] : memref<8x128xf32, #tpu.memory_space<vmem>>, vector<8x128xf32>
    tpu.vector_store %arg7[%c0_6, %c0_7], %7 {strides = array<i32>} : memref<8x128xf32, #tpu.memory_space<vmem>>, vector<8x128xf32>,
    %c1_i32 = arith.constant 1 : i32
    %9 = arith.cmpi eq, %arg1, %c1_i32 : i32
    %10 = arith.extui %9 : i1 to i32
    %c0_i32_8 = arith.constant 0 : i32
    %11 = arith.cmpi ne, %10, %c0_i32_8 : i32
    scf.if %11 {
      %c0_9 = arith.constant 0 : index
      %c0_10 = arith.constant 0 : index
      %12 = vector.load %arg7[%c0_9, %c0_10] : memref<8x128xf32, #tpu.memory_space<vmem>>, vector<8x128xf32>
      %13 = arith.mulf %12, %12 : vector<8x128xf32>
      %cst_11 = arith.constant dense<0.000000e+00> : vector<8xf32>
      %14 = vector.multi_reduction <add>, %13, %cst_11 [1] : vector<8x128xf32> to vector<8xf32>
      %15 = vector.shape_cast %14 : vector<8xf32> to vector<8x1xf32>
      %cst_12 = arith.constant 1.000000e-24 : f32
      %16 = vector.broadcast %cst_12 : f32 to vector<8x1xf32>
      %17 = arith.maximumf %15, %16 : vector<8x1xf32>
      %18 = math.rsqrt %17 : vector<8x1xf32>
      %19 = vector.broadcast %18 : vector<8x1xf32> to vector<8x128xf32>
      %20 = arith.mulf %12, %19 : vector<8x128xf32>
      %c0_13 = arith.constant 0 : index
      %c0_14 = arith.constant 0 : index
      %21 = vector.load %arg4[%c0_13, %c0_14] : memref<128x128xf32, #tpu.memory_space<vmem>>, vector<128x128xf32>
      %cst_15 = arith.constant dense<0.000000e+00> : vector<8x128xf32>
      %22 = tpu.matmul %20, %21, %cst_15 {dimension_numbers = #tpu.dot_dimension_numbers<[1], [0], [0], [1], [0, 0, 1, 1], [], []>} : vector<8x128xf32>, vector<128x128xf32>, vector<8x128xf32> -> vector<8x128xf32>
      %c0_16 = arith.constant 0 : index
      %c0_17 = arith.constant 0 : index
      %23 = vector.load %arg5[%c0_16, %c0_17] : memref<1x128xf32, #tpu.memory_space<vmem>>, vector<1x128xf32>
      %24 = vector.broadcast %23 : vector<1x128xf32> to vector<8x128xf32>
      %25 = arith.addf %22, %24 : vector<8x128xf32>
      %c0_18 = arith.constant 0 : index
      %c0_19 = arith.constant 0 : index
      %26 = vector.load %arg6[%c0_18, %c0_19] : memref<8x128xf32, #tpu.memory_space<vmem>>, vector<8x128xf32>
      tpu.vector_store %arg6[%c0_18, %c0_19], %25 {strides = array<i32>} : memref<8x128xf32, #tpu.memory_space<vmem>>, vector<8x128xf32>,
    } else {
    }
    return
  }
  func.func @transform_0(%arg0: i32, %arg1: i32) -> (i32, i32) {
    %c0_i32 = arith.constant 0 : i32
    return %arg0, %arg1 : i32, i32
  }
  func.func @transform_1(%arg0: i32, %arg1: i32) -> (i32, i32) {
    %c0_i32 = arith.constant 0 : i32
    %c0_i32_0 = arith.constant 0 : i32
    return %arg1, %c0_i32 : i32, i32
  }
  func.func @transform_2(%arg0: i32, %arg1: i32) -> (i32, i32) {
    %c0_i32 = arith.constant 0 : i32
    %c0_i32_0 = arith.constant 0 : i32
    %c0_i32_1 = arith.constant 0 : i32
    return %c0_i32, %c0_i32_0 : i32, i32
  }
  func.func @transform_3(%arg0: i32, %arg1: i32) -> (i32, i32) {
    %c0_i32 = arith.constant 0 : i32
    %c0_i32_0 = arith.constant 0 : i32
    %c0_i32_1 = arith.constant 0 : i32
    return %c0_i32, %c0_i32_0 : i32, i32
  }
  func.func @transform_4(%arg0: i32, %arg1: i32) -> (i32, i32) {
    %c0_i32 = arith.constant 0 : i32
    %c0_i32_0 = arith.constant 0 : i32
    return %arg0, %c0_i32 : i32, i32
  }
}

</mosaic_0001>

<bundles_post_ra>
// kernel: tpu_custom_call.1
= control target key start
LH: loop header
LB: loop body
LE: loop exit
PB: predicated region body
PF: predicated region fallthrough
CT: control target
= control target key end

     0   :  { %s1134_s0 = inlined_call_operand.hbm [shape: f32[8,1024], index: 0, kind: input, shape index: {}]   ;;  %s1135_s1 = inlined_call_operand.hbm [shape: f32[1024,128], index: 1, kind: input, shape index: {}]   ;;  %s1136_s2 = inlined_call_operand.hbm [shape: f32[128,128], index: 2, kind: input, shape index: {}]   ;;  %s1137_s3 = inlined_call_operand.vmem [shape: f32[1,128], index: 3, kind: input, shape index: {}]   ;;  %s1138_s4 = inlined_call_operand.hbm [shape: f32[8,128], index: 4, kind: output, shape index: {}]  }
   0x1   :  { %1142 = sst [smem:[#allocation15_spill]] %s1136_s2 }
   0x2   :  { %9 = vsyncpa [#allocation4], 0 }
   0x3   :  { %11 = vsyncpa [#allocation4 + $0x1], 0 }
   0x4   :  { %12 = vsyncpa [#allocation7], 0 }
   0x5   :  { %14 = vsyncpa [#allocation7 + $0x1], 0 }
   0x6   :  { %15 = vsyncpa [#allocation5], 0  ;;  %s927_s15 = smov 0   ;;  %s929_s16 = smov 0  }
   0x7   :  { %s931_s17 = smov 0   ;;  %s933_s18 = smov 0  }
   0x8   :  { %s935_s19 = smov 0   ;;  %s937_s20 = smov 0  }
   0x9 LB: > { %s958_s21 = sadd.s32 4294967295, %s895_s20   ;;  %p610_p0 = scmp.ge.s32.totalorder %s895_s20, 1  ;;  %s895_s20 = sphi %s937_s20, %s21_s20   ;;  %s891_s19 = sphi %s935_s19, %s1155_s19   ;;  %s887_s18 = sphi %s933_s18, %s1154_s18   ;;  %s883_s17 = sphi %s931_s17, %s1153_s17   ;;  %s879_s16 = sphi %s929_s16, %s1152_s16   ;;  %s875_s15 = sphi %s927_s15, %s1151_s15  }
   0xa   : > { %p56_p1 = scmp.eq.s32.totalorder %s958_s21, 0  ;;  %p160_p2 = scmp.lt.s32.totalorder %s895_s20, 3 }
   0xb   : > { %s1143_s2 = sld [smem:[#allocation15_spill]]  ;;  %s897_s26 = smov [#allocation8]  }
   0xc   : > { %p966_p3 = pnand %p610_p0, %p160_p2  ;;  %s173_s27 = sshll.u32 %s897_s26, 4  ;;  %s174_s27 = int_to_ptr.vmem [resolvable:$true] %s173_s27 }
   0xd   : > { %s1139_s28 = smov 128   ;;  %s1140_s29 = smov 8  }
   0xe   : > { %p643_p4 = pneg %p966_p3  ;;  %s30_s30 = sadd.s32 1, %s891_s19 }
   0xf   : > { %p31_p6 = scmp.ge.s32.totalorder %s30_s30, 2  ;;  %s42_s5 = sadd.s32 1, %s883_s17 }
  0x10   : > { %p644_p5 = pnand %p643_p4, %p56_p1  ;;  %p49_p7 = scmp.ne.s32.totalorder %s883_s17, %s879_s16 }
  0x11   : > { %s171_s24 = sshll.u32 %s1143_s2, 4  ;;  %p50_p8 = scmp.eq.s32.totalorder %s895_s20, 0  ;;  %s172_s24 = int_to_ptr.hbm [resolvable:$true] %s171_s24 }
  0x12   : > { %646 = dma.hbm_to_vmem [thread:$0]  (!%p644_p5), %s172_s24, 2048, %s174_s27, [#allocation7], %s1139_s28, %s1139_s28, %s1140_s29  }
  0x13   : > { %s1157_s30 = smov (%p31_p6, %s30_s30), 0  ;;  %p984_p9 = por %p50_p8, %p49_p7 }
  0x14   : > { %1145 = sst [smem:[#allocation14_spill]] %s1157_s30  ;;  %p55_p10 = scmp.ne.s32.totalorder %s879_s16, %s875_s15 }
  0x15   : > { %s38_s7 = ssub.s32 %s891_s19, %s1157_s30  ;;  %p655_p11 = scmp.lt.s32.totalorder %s895_s20, 2 }
  0x16   : > { %p40_p12 = scmp.eq.s32.totalorder %s38_s7, 0  ;;  %p995_p13 = por %p56_p1, %p55_p10 }
  0x17   : > { %s190_s9 = sand.u32 1, %s883_s17   ;;  %s629_s10 = sshll.u32 %s891_s19, 5 }
  0x18   : > { %s1002_s11 = scalar_select %p40_p12, %s883_s17, %s42_s5  }
  0x19   : > { %s613_s12 = sshll.u32 %s190_s9, 5  ;;  %s201_s22 = scalar_lea.hbm %s1134_s0, %s629_s10 }
  0x1a   : > { %s203_s15 = sshll.u32 %s201_s22, 4  ;;  %s194_s23 = scalar_lea.vmem [#allocation3], %s613_s12  ;;  %s204_s15 = int_to_ptr.hbm [resolvable:$true] %s203_s15 }
  0x1b   : > { %s205_s24 = sshll.u32 %s194_s23, 4  ;;  %p648_p0 = pnand %p655_p11, %p984_p9  ;;  %s206_s24 = int_to_ptr.vmem [resolvable:$true] %s205_s24 }
  0x1c   : > { %s616_s26 = sshll.u32 %s190_s9, 9  ;;  %s630_s27 = sshll.u32 %s891_s19, 9 }
  0x1d   : > { %s216_s7 = scalar_lea.vmem [#allocation6], %s616_s26  ;;  %s191_s5 = scalar_lea.sflag [#allocation4], %s190_s9 }
  0x1e   : > { %s224_s28 = sshll.u32 %s216_s7, 4  ;;  %s212_s29 = sand.u32 1, %s895_s20   ;;  %s225_s28 = int_to_ptr.vmem [resolvable:$true] %s224_s28 }
  0x1f   : > { %650 = dma.hbm_to_vmem [thread:$0]  (!%p648_p0), %s204_s15, 512, %s206_s24, %s191_s5  }
  0x20   : > { %s221_s10 = scalar_lea.hbm %s1135_s1, %s630_s27  ;;  %s213_s12 = scalar_lea.sflag [#allocation7], %s212_s29 }
  0x21   : > { %s222_s13 = sshll.u32 %s221_s10, 4  ;;  %s1148_s14 = smov 8   ;;  %s223_s13 = int_to_ptr.hbm [resolvable:$true] %s222_s13 }
  0x22   : > { %s1149_s22 = smov 128   ;;  %236 = sbr.rel (%p966_p3) target bundleno = 508 (0x1fc), region = 36 }
  0x23   : > { %653 = dma.hbm_to_vmem [thread:$0]  (!%p648_p0), %s223_s13, 8192, %s225_s28, %s213_s12, %s1149_s22, %s1149_s22, %s1148_s14  }
  0x24   : > { %s238_s6 = sand.u32 (!%p966_p3), 1, %s879_s16  }
  0x25   : > { %s620_s9 = sshll.u32 (!%p966_p3), %s238_s6, 5  ;;  %s239_s15 = scalar_lea.sflag (!%p966_p3), [#allocation4], %s238_s6 }
  0x26   : > { %s1022_s23 = scalar_lea.vmem (!%p966_p3), [#allocation3], %s620_s9 }
  0x27   : > { %858 = dma.done.wait (%p995_p13), %s239_s15, 512  }
  0x28   : > { %860 = vsyncadd (%p995_p13), %s239_s15, 4294966784  ;;  %s248_s2 = sand.u32 1, %s958_s21   ;;  %s621_s29 = sshll.u32 %s238_s6, 9 }
  0x29   : > { %s249_s28 = scalar_lea.sflag [#allocation7], %s248_s2  ;;  %s1029_s30 = scalar_lea.vmem [#allocation6], %s621_s29 }
  0x2a   : > { %862 = dma.done.wait (%p995_p13), %s249_s28, 8192  }
  0x2b   : > { %864 = vsyncadd (%p995_p13), %s249_s28, 4294959104 }
  0x2c   : > { %866 = dma.done.wait (%p56_p1), [#allocation7], 2048  }
  0x2d   : > { %868 = vsyncadd (%p56_p1), [#allocation7], 4294965248  ;;  %p623_p2 = scmp.ne.s32.totalorder %s887_s18, 0 }
  0x2f   : > { %288 = sbr.rel (%p623_p2) target bundleno = 54 (0x36), region = 52 }
  0x34   : > { %v900_v0 = vmov 0.0  }
  0x35   : > { %289 = vst [vmem:[#allocation2] sm:$0xff] %v900_v0 }
  0x36 PF: > { %v342_v1 = vld [vmem:[%s1029_s30 + $0x178] sm:$0xff]  ;;  %v341_v2 = vld [vmem:[%s1029_s30 + $0x170] sm:$0xff]  ;;  %v340_v6 = vld [vmem:[%s1029_s30 + $0x168] sm:$0xff]  ;;  %p624_p1 = scmp.ne.s32.totalorder %s887_s18, 1 }
  0x37   : > { %v358_v3 = vld [vmem:[%s1029_s30 + $0x1f8] sm:$0xff]  ;;  %399 = vmatpush.msra.mxu2 %v342_v1  ;;  %v357_v7 = vld [vmem:[%s1029_s30 + $0x1f0] sm:$0xff]  ;;  %v356_v10 = vld [vmem:[%s1029_s30 + $0x1e8] sm:$0xff] }
  0x38   : > { %419 = vmatpush.msra.mxu3 %v358_v3  ;;  %v310_v4 = vld [vmem:[%s1029_s30 + $0x78] sm:$0xff]  ;;  %v309_v8 = vld [vmem:[%s1029_s30 + $0x70] sm:$0xff]  ;;  %v308_v11 = vld [vmem:[%s1029_s30 + $0x68] sm:$0xff] }
  0x39   : > { %v326_v5 = vld [vmem:[%s1029_s30 + $0xf8] sm:$0xff]  ;;  %359 = vmatpush.msra.mxu0 %v310_v4  ;;  %v325_v9 = vld [vmem:[%s1029_s30 + $0xf0] sm:$0xff]  ;;  %400 = vmatpush.msra.mxu2 %v341_v2  ;;  %v339_v12 = vld [vmem:[%s1029_s30 + $0x160] sm:$0xff] }
  0x3a   : > { %379 = vmatpush.msra.mxu1 %v326_v5  ;;  %420 = vmatpush.msra.mxu3 %v357_v7  ;;  %v324_v13 = vld [vmem:[%s1029_s30 + $0xe8] sm:$0xff]  ;;  %v355_v14 = vld [vmem:[%s1029_s30 + $0x1e0] sm:$0xff]  ;;  %v338_v17 = vld [vmem:[%s1029_s30 + $0x158] sm:$0xff] }
  0x3b   : > { %360 = vmatpush.msra.mxu0 %v309_v8  ;;  %401 = vmatpush.msra.mxu2 %v340_v6  ;;  %v307_v15 = vld [vmem:[%s1029_s30 + $0x60] sm:$0xff]  ;;  %v354_v18 = vld [vmem:[%s1029_s30 + $0x1d8] sm:$0xff]  ;;  %v337_v21 = vld [vmem:[%s1029_s30 + $0x150] sm:$0xff] }
  0x3c   : > { %380 = vmatpush.msra.mxu1 %v325_v9  ;;  %421 = vmatpush.msra.mxu3 %v356_v10  ;;  %v323_v16 = vld [vmem:[%s1029_s30 + $0xe0] sm:$0xff]  ;;  %v306_v19 = vld [vmem:[%s1029_s30 + $0x58] sm:$0xff]  ;;  %v353_v22 = vld [vmem:[%s1029_s30 + $0x1d0] sm:$0xff] }
  0x3d   : > { %361 = vmatpush.msra.mxu0 %v308_v11  ;;  %402 = vmatpush.msra.mxu2 %v339_v12  ;;  %v322_v20 = vld [vmem:[%s1029_s30 + $0xd8] sm:$0xff]  ;;  %v305_v23 = vld [vmem:[%s1029_s30 + $0x50] sm:$0xff]  ;;  %v336_v25 = vld [vmem:[%s1029_s30 + $0x148] sm:$0xff] }
  0x3e   : > { %381 = vmatpush.msra.mxu1 %v324_v13  ;;  %422 = vmatpush.msra.mxu3 %v355_v14  ;;  %v321_v24 = vld [vmem:[%s1029_s30 + $0xd0] sm:$0xff]  ;;  %v352_v26 = vld [vmem:[%s1029_s30 + $0x1c8] sm:$0xff]  ;;  %v335_v29 = vld [vmem:[%s1029_s30 + $0x140] sm:$0xff] }
  0x3f   : > { %362 = vmatpush.msra.mxu0 %v307_v15  ;;  %403 = vmatpush.msra.mxu2 %v338_v17  ;;  %v304_v27 = vld [vmem:[%s1029_s30 + $0x48] sm:$0xff]  ;;  %v351_v30 = vld [vmem:[%s1029_s30 + $0x1c0] sm:$0xff]  ;;  %v334_v33 = vld [vmem:[%s1029_s30 + $0x138] sm:$0xff] }
  0x40   : > { %382 = vmatpush.msra.mxu1 %v323_v16  ;;  %423 = vmatpush.msra.mxu3 %v354_v18  ;;  %v320_v28 = vld [vmem:[%s1029_s30 + $0xc8] sm:$0xff]  ;;  %v303_v31 = vld [vmem:[%s1029_s30 + $0x40] sm:$0xff]  ;;  %v350_v34 = vld [vmem:[%s1029_s30 + $0x1b8] sm:$0xff] }
  0x41   : > { %363 = vmatpush.msra.mxu0 %v306_v19  ;;  %404 = vmatpush.msra.mxu2 %v337_v21  ;;  %v319_v32 = vld [vmem:[%s1029_s30 + $0xc0] sm:$0xff]  ;;  %v302_v35 = vld [vmem:[%s1029_s30 + $0x38] sm:$0xff]  ;;  %v333_v37 = vld [vmem:[%s1029_s30 + $0x130] sm:$0xff] }
  0x42   : > { %383 = vmatpush.msra.mxu1 %v322_v20  ;;  %424 = vmatpush.msra.mxu3 %v353_v22  ;;  %v318_v36 = vld [vmem:[%s1029_s30 + $0xb8] sm:$0xff]  ;;  %v349_v38 = vld [vmem:[%s1029_s30 + $0x1b0] sm:$0xff]  ;;  %v332_v41 = vld [vmem:[%s1029_s30 + $0x128] sm:$0xff] }
  0x43   : > { %364 = vmatpush.msra.mxu0 %v305_v23  ;;  %405 = vmatpush.msra.mxu2 %v336_v25  ;;  %v301_v39 = vld [vmem:[%s1029_s30 + $0x30] sm:$0xff]  ;;  %v348_v42 = vld [vmem:[%s1029_s30 + $0x1a8] sm:$0xff]  ;;  %v331_v45 = vld [vmem:[%s1029_s30 + $0x120] sm:$0xff] }
  0x44   : > { %384 = vmatpush.msra.mxu1 %v321_v24  ;;  %425 = vmatpush.msra.mxu3 %v352_v26  ;;  %v317_v40 = vld [vmem:[%s1029_s30 + $0xb0] sm:$0xff]  ;;  %v300_v43 = vld [vmem:[%s1029_s30 + $0x28] sm:$0xff]  ;;  %v347_v46 = vld [vmem:[%s1029_s30 + $0x1a0] sm:$0xff] }
  0x45   : > { %365 = vmatpush.msra.mxu0 %v304_v27  ;;  %406 = vmatpush.msra.mxu2 %v335_v29  ;;  %v316_v44 = vld [vmem:[%s1029_s30 + $0xa8] sm:$0xff]  ;;  %v299_v47 = vld [vmem:[%s1029_s30 + $0x20] sm:$0xff]  ;;  %v330_v49 = vld [vmem:[%s1029_s30 + $0x118] sm:$0xff] }
  0x46   : > { %385 = vmatpush.msra.mxu1 %v320_v28  ;;  %426 = vmatpush.msra.mxu3 %v351_v30  ;;  %v315_v48 = vld [vmem:[%s1029_s30 + $0xa0] sm:$0xff]  ;;  %v346_v50 = vld [vmem:[%s1029_s30 + $0x198] sm:$0xff]  ;;  %v329_v53 = vld [vmem:[%s1029_s30 + $0x110] sm:$0xff] }
  0x47   : > { %366 = vmatpush.msra.mxu0 %v303_v31  ;;  %407 = vmatpush.msra.mxu2 %v334_v33  ;;  %v298_v51 = vld [vmem:[%s1029_s30 + $0x18] sm:$0xff]  ;;  %v345_v54 = vld [vmem:[%s1029_s30 + $0x190] sm:$0xff]  ;;  %v328_v57 = vld [vmem:[%s1029_s30 + $0x108] sm:$0xff] }
  0x48   : > { %386 = vmatpush.msra.mxu1 %v319_v32  ;;  %427 = vmatpush.msra.mxu3 %v350_v34  ;;  %v314_v52 = vld [vmem:[%s1029_s30 + $0x98] sm:$0xff]  ;;  %v297_v55 = vld [vmem:[%s1029_s30 + $0x10] sm:$0xff]  ;;  %v344_v58 = vld [vmem:[%s1029_s30 + $0x188] sm:$0xff] }
  0x49   : > { %367 = vmatpush.msra.mxu0 %v302_v35  ;;  %408 = vmatpush.msra.mxu2 %v333_v37  ;;  %v313_v56 = vld [vmem:[%s1029_s30 + $0x90] sm:$0xff]  ;;  %v296_v59 = vld [vmem:[%s1029_s30 + $0x8] sm:$0xff]  ;;  %v327_v61 = vld [vmem:[%s1029_s30 + $0x100] sm:$0xff] }
  0x4a   : > { %387 = vmatpush.msra.mxu1 %v318_v36  ;;  %428 = vmatpush.msra.mxu3 %v349_v38  ;;  %v312_v60 = vld [vmem:[%s1029_s30 + $0x88] sm:$0xff]  ;;  %v343_v62 = vld [vmem:[%s1029_s30 + $0x180] sm:$0xff]  ;;  %v293_v63 = vld [vmem:[%s1022_s23 + $0x10] sm:$0xff] }
  0x4b   : > { %368 = vmatpush.msra.mxu0 %v301_v39  ;;  %409 = vmatpush.msra.mxu2 %v332_v41  ;;  %v294_v0 = vld [vmem:[%s1022_s23 + $0x18] sm:$0xff]  ;;  %v295_v1 = vld [vmem:[%s1029_s30] sm:$0xff]  ;;  %v292_v4 = vld [vmem:[%s1022_s23 + $0x8] sm:$0xff] }
  0x4c   : > { %388 = vmatpush.msra.mxu1 %v317_v40  ;;  %429 = vmatpush.msra.mxu3 %v348_v42  ;;  %v311_v2 = vld [vmem:[%s1029_s30 + $0x80] sm:$0xff]  ;;  %v290_v11 = vld [vmem:[#allocation2] sm:$0xff] }
  0x4d   : > { %369 = vmatpush.msra.mxu0 %v300_v43  ;;  %410 = vmatpush.msra.mxu2 %v331_v45  ;;  %v291_v3 = vld [vmem:[%s1022_s23] sm:$0xff] }
  0x4e   : > { %389 = vmatpush.msra.mxu1 %v316_v44  ;;  %430 = vmatpush.msra.mxu3 %v347_v46 }
  0x4f   : > { %370 = vmatpush.msra.mxu0 %v299_v47  ;;  %411 = vmatpush.msra.mxu2 %v330_v49 }
  0x50   : > { %390 = vmatpush.msra.mxu1 %v315_v48  ;;  %431 = vmatpush.msra.mxu3 %v346_v50 }
  0x51   : > { %371 = vmatpush.msra.mxu0 %v298_v51  ;;  %412 = vmatpush.msra.mxu2 %v329_v53 }
  0x52   : > { %391 = vmatpush.msra.mxu1 %v314_v52  ;;  %432 = vmatpush.msra.mxu3 %v345_v54 }
  0x53   : > { %372 = vmatpush.msra.mxu0 %v297_v55  ;;  %413 = vmatpush.msra.mxu2 %v328_v57 }
  0x54   : > { %392 = vmatpush.msra.mxu1 %v313_v56  ;;  %433 = vmatpush.msra.mxu3 %v344_v58 }
  0x55   : > { %373 = vmatpush.msra.mxu0 %v296_v59  ;;  %414 = vmatpush.msra.mxu2 %v327_v61 }
  0x56   : > { %393 = vmatpush.msra.mxu1 %v312_v60  ;;  %434 = vmatpush.msra.mxu3 %v343_v62 }
  0x57   : > { %415 = vmatmul.f32.vlgmr.msra.gmra.mxu2 %v293_v63  ;;  %435 = vmatmul.f32.vlgmr.msra.gmra.mxu3 %v294_v0 }
  0x58   : > { %374 = vmatpush.msra.mxu0 %v295_v1  ;;  %394 = vmatpush.msra.mxu1 %v311_v2 }
  0x59   : > { %375 = vmatmul.f32.vlgmr.msra.gmra.mxu0 %v291_v3  ;;  %395 = vmatmul.f32.vlgmr.msra.gmra.mxu1 %v292_v4 }
  0xd6   : > { %v376_v5 = vpop.f32.mrf.mxu0  ;;  %v396_v6 = vpop.f32.mrf.mxu1 }
  0xd7   : > { %v397_v7 = vadd.f32 %v396_v6, %v376_v5 }
  0xda   : > { %v416_v8 = vpop.f32.mrf.mxu2  ;;  %v436_v9 = vpop.f32.mrf.mxu3 }
  0xdb   : > { %v417_v10 = vadd.f32 %v416_v8, %v397_v7 }
  0xdd   : > { %v437_v12 = vadd.f32 %v436_v9, %v417_v10  ;;  %444 = sbr.rel (%p624_p1) target bundleno = 502 (0x1f6), region = 56 }
  0xdf   : > { %v439_v13 = vadd.f32 %v437_v12, %v290_v11 }
  0xe1   : > { %440 = vst [vmem:[#allocation2] sm:$0xff] %v439_v13 }
  0xe2   : > { %v476_v15 = vld [vmem:[#allocation8 + $0x78] sm:$0xff]  ;;  %v475_v16 = vld [vmem:[#allocation8 + $0x70] sm:$0xff]  ;;  %v474_v18 = vld [vmem:[#allocation8 + $0x68] sm:$0xff] }
  0xe3   : > { %481 = vmatpush.msra.mxu0 %v476_v15  ;;  %v473_v19 = vld [vmem:[#allocation8 + $0x60] sm:$0xff]  ;;  %v472_v20 = vld [vmem:[#allocation8 + $0x58] sm:$0xff]  ;;  %v471_v21 = vld [vmem:[#allocation8 + $0x50] sm:$0xff] }
  0xe4   : > { %v470_v22 = vld [vmem:[#allocation8 + $0x48] sm:$0xff]  ;;  %v469_v23 = vld [vmem:[#allocation8 + $0x40] sm:$0xff]  ;;  %v468_v24 = vld [vmem:[#allocation8 + $0x38] sm:$0xff] }
  0xe5   : > { %482 = vmatpush.msra.mxu0 %v475_v16  ;;  %v467_v25 = vld [vmem:[#allocation8 + $0x30] sm:$0xff]  ;;  %v466_v26 = vld [vmem:[#allocation8 + $0x28] sm:$0xff]  ;;  %v465_v27 = vld [vmem:[#allocation8 + $0x20] sm:$0xff] }
  0xe6   : > { %v464_v28 = vld [vmem:[#allocation8 + $0x18] sm:$0xff]  ;;  %v463_v29 = vld [vmem:[#allocation8 + $0x10] sm:$0xff]  ;;  %v462_v30 = vld [vmem:[#allocation8 + $0x8] sm:$0xff] }
  0xe7   : > { %483 = vmatpush.msra.mxu0 %v474_v18  ;;  %v461_v31 = vld [vmem:[#allocation8] sm:$0xff]  ;;  %v712_v42 = vld [vmem:[%s1137_s3] ss:$0 sm:$0xff] }
  0xe8   : > { %v445_v14 = vld [vmem:[#allocation2] sm:$0xff] }
  0xe9   : > { %v446_v17 = vmul.f32 %v445_v14, %v445_v14  ;;  %484 = vmatpush.msra.mxu0 %v473_v19 }
  0xeb   : > { %447 = vadd.xlane.f32.xlu0 %v446_v17  ;;  %485 = vmatpush.msra.mxu0 %v472_v20 }
  0xed   : > { %486 = vmatpush.msra.mxu0 %v471_v21 }
  0xef   : > { %487 = vmatpush.msra.mxu0 %v470_v22 }
  0xf1   : > { %488 = vmatpush.msra.mxu0 %v469_v23 }
  0xf3   : > { %489 = vmatpush.msra.mxu0 %v468_v24 }
  0xf5   : > { %490 = vmatpush.msra.mxu0 %v467_v25 }
  0xf7   : > { %491 = vmatpush.msra.mxu0 %v466_v26 }
  0xf9   : > { %492 = vmatpush.msra.mxu0 %v465_v27 }
  0xfb   : > { %493 = vmatpush.msra.mxu0 %v464_v28 }
  0xfd   : > { %494 = vmatpush.msra.mxu0 %v463_v29 }
  0xff   : > { %495 = vmatpush.msra.mxu0 %v462_v30 }
 0x101   : > { %496 = vmatpush.msra.mxu0 %v461_v31 }
 0x15e   : > { %v448_v32 = vpop.xlane.xlu0 %447 }
 0x15f   : > { %v449_v33 = vmax.f32 %v448_v32, 1e-24 }
 0x161   : > { %713 = vrsqrt.f32 %v449_v33  ;;  %vm456_vm1 = vweird.f32 %v449_v33 }
 0x167   : > { %v714_v34 = vpop.eup %713 }
 0x168   : > { %v451_v35 = vmul.f32 %v714_v34, %v449_v33  ;;  %vm457_vm0 = vweird.f32 %v714_v34 }
 0x169   : > { %vm458_vm2 = vmor %vm456_vm1, %vm457_vm0 }
 0x16a   : > { %v452_v36 = vmul.f32 %v714_v34, %v451_v35 }
 0x16c   : > { %v453_v37 = vmul.f32 0.5, %v452_v36 }
 0x16e   : > { %v454_v38 = vsub.f32 1.5, %v453_v37 }
 0x170   : > { %v455_v39 = vmul.f32 %v714_v34, %v454_v38 }
 0x172   : > { %v459_v40 = vsel %vm458_vm2, %v714_v34, %v455_v39 }
 0x173   : > { %v460_v41 = vmul.f32 %v459_v40, %v445_v14 }
 0x175   : > { %497 = vmatmul.f32.vlgmr.msra.gmra.mxu0 %v460_v41 }
 0x1f2   : > { %v498_v43 = vpop.f32.mrf.mxu0 }
 0x1f3   : > { %v499_v44 = vadd.f32 %v712_v42, %v498_v43 }
 0x1f5   : > { %501 = vst [vmem:[#allocation9] sm:$0xff] %v499_v44 }
 0x1f6 PF: > { %p657_p3 = scmp.eq.s32.totalorder %s958_s21, 1  ;;  %s512_s26 = sshll.u32 %s1138_s4, 4  ;;  %s513_s26 = int_to_ptr.hbm [resolvable:$true] %s512_s26 }
 0x1f7   : > { %s901_s27 = smov [#allocation9]  }
 0x1f8   : > { %s510_s7 = sshll.u32 %s901_s27, 4  ;;  %s511_s7 = int_to_ptr.vmem [resolvable:$true] %s510_s7 }
 0x1f9   : > { %640 = dma.vmem_to_hbm [thread:$0]  (%p657_p3), %s511_s7, 128, %s513_s26, [#allocation5]  }
 0x1fa   : > { %870 = dma.done.wait (%p657_p3), [#allocation5], 128  }
 0x1fb   : > { %872 = vsyncadd (%p657_p3), [#allocation5], 4294967168 }
 0x1fc PF: > { %s21_s20 = sadd.s32 1, %s895_s20   ;;  %s1150_s21 = sld [smem:[#allocation14_spill]] }
 0x1fd   : > { %p18_p4 = scmp.ge.s32.totalorder %s21_s20, 4   ;;  %s1151_s15 = smov %s879_s16 }
 0x1fe   : > { %s1152_s16 = smov %s883_s17  ;;  %s1153_s17 = smov %s1002_s11 }
 0x1ff   : > { %s1154_s18 = smov %s891_s19  ;;  %20 = sbr.rel (!%p18_p4) target bundleno = 9 (0x9), region = 99 }
 0x202   : > { %s1155_s19 = smov %s1150_s21 }
 0x204   :  { %526 = vsyncpa [#allocation4], 1 }
 0x205   :  { %528 = vsyncpa [#allocation4 + $0x1], 1 }
 0x206   :  { %529 = vsyncpa [#allocation7], 1 }
 0x207   :  { %531 = vsyncpa [#allocation7 + $0x1], 1 }
 0x208   :  { %532 = vsyncpa [#allocation5], 1 }
 0x209   :  { %534 = vsyncpa [#allocation5 + $0x1], 1 }

</bundles_post_ra>
